<compile_context>
chip_gen: v5e
topology: v5e:2x2
jax: 0.10.0
libtpu: 0.0.40
codegen_flags: <defaults>
</compile_context>

<pallas_src>
import functools
import math

import jax
import jax.numpy as jnp
from jax import lax
from jax.experimental import pallas as pl
from jax.experimental.pallas import tpu as pltpu


def _round_up(x, m):
    return ((x + m - 1) // m) * m


def _vmem_capacity_bytes():
    """Physical VMEM per TensorCore, by device generation (fallback: 128 MiB)."""
    try:
        kind = jax.devices()[0].device_kind.lower().replace(" ", "")
    except Exception:  # no device info available
        kind = ""
    if "v7" in kind or "tpu7" in kind:
        return 64 * 1024 * 1024
    return 128 * 1024 * 1024


def _layernorm_kernel(x_ref, gamma_ref, beta_ref, o_ref, *, eps, features, padded):
    # x_ref: (block_rows, fp); gamma/beta: (1, fp), grid-resident.
    x = x_ref[...].astype(jnp.float32)
    gamma = gamma_ref[...].astype(jnp.float32)
    beta = beta_ref[...].astype(jnp.float32)

    # Padded feature columns hold zeros, so the plain sum gives the exact mean
    # over the *true* feature count.
    mean = jnp.sum(x, axis=-1, keepdims=True) * jnp.float32(1.0 / features)
    diff = x - mean
    if padded:
        col = lax.broadcasted_iota(jnp.int32, x.shape, 1)
        dmask = jnp.where(col < features, diff, jnp.float32(0.0))
    else:
        dmask = diff
    # Unbiased variance (Bessel's correction) to match torch.Tensor.std default.
    var = jnp.sum(dmask * dmask, axis=-1, keepdims=True) * jnp.float32(
        1.0 / (features - 1)
    )
    std = jnp.sqrt(var)
    # One reciprocal per row instead of a features-wide divide (exact, so results
    # stay bit-close to the reference divide).
    inv = pl.reciprocal(std + jnp.float32(eps), approx=False)
    o_ref[...] = (gamma * (diff * inv) + beta).astype(o_ref.dtype)


def layer_norm(x, a_2, b_2, eps=1e-6, block_rows=None):
    """x: (..., features); a_2, b_2: (features,). Returns same shape/dtype as x."""
    orig_shape = x.shape
    features = orig_shape[-1]
    assert features > 1, "unbiased std needs features > 1"
    rows = math.prod(orig_shape[:-1]) if len(orig_shape) > 1 else 1

    x2 = x.reshape(rows, features)
    gamma = a_2.reshape(1, features)
    beta = b_2.reshape(1, features)

    # --- Lane-dense feature axis: pad to a multiple of 128 in the wrapper. ---
    LANE = 128
    fp = _round_up(features, LANE)
    padded = fp != features
    if padded:
        pad = fp - features
        x2 = jnp.pad(x2, ((0, 0), (0, pad)))
        gamma = jnp.pad(gamma, ((0, 0), (0, pad)))
        beta = jnp.pad(beta, ((0, 0), (0, pad)))

    itemsize = jnp.dtype(x.dtype).itemsize
    # Sublane packing multiple: 8 for f32, 16 for bf16, 32 for int8/fp8.
    row_mult = 8 * max(1, 4 // itemsize)
    row_bytes = fp * itemsize

    vmem_cap = _vmem_capacity_bytes()
    # Byte-targeted tiles: ~8 MiB on 128-MiB-VMEM chips, ~4 MiB on v7x (64 MiB).
    target_bytes = (8 if vmem_cap >= 128 * 1024 * 1024 else 4) * 1024 * 1024

    if block_rows is None:
        if rows <= row_mult:
            block_rows = rows  # single tiny block; block == full dim is legal
        else:
            br = max(row_mult, (target_bytes // row_bytes // row_mult) * row_mult)
            if br >= rows:
                # A single grid step would idle one v7x TensorCore and kill
                # DMA/compute overlap; aim for ~4 steps instead.
                br = _round_up(max(1, -(-rows // 4)), row_mult)
            block_rows = min(br, rows)
    else:
        block_rows = int(block_rows)
        if block_rows < rows:
            block_rows = max(row_mult, (block_rows // row_mult) * row_mult)
        else:
            block_rows = rows
    block_rows = int(block_rows)

    grid_rows = pl.cdiv(rows, block_rows)

    # VMEM budget from the actual footprint: 2x input + 2x output double
    # buffers plus ~2 block-sized f32 temporaries; clamp to 75% of physical.
    block_bytes = block_rows * fp * itemsize
    temps_f32 = 2 * block_rows * fp * 4
    vmem_needed = 4 * block_bytes + temps_f32 + (2 << 20)
    vmem_limit = min(int(0.75 * vmem_cap), max(32 << 20, vmem_needed))

    kernel = functools.partial(
        _layernorm_kernel, eps=eps, features=features, padded=padded
    )

    out = pl.pallas_call(
        kernel,
        out_shape=jax.ShapeDtypeStruct((rows, fp), x.dtype),
        grid_spec=pltpu.PrefetchScalarGridSpec(
            num_scalar_prefetch=0,
            grid=(grid_rows,),
            in_specs=[
                pl.BlockSpec((block_rows, fp), lambda i: (i, 0)),
                pl.BlockSpec((1, fp), lambda i: (0, 0)),  # gamma (resident)
                pl.BlockSpec((1, fp), lambda i: (0, 0)),  # beta  (resident)
            ],
            out_specs=pl.BlockSpec((block_rows, fp), lambda i: (i, 0)),
        ),
        compiler_params=pltpu.CompilerParams(
            dimension_semantics=("parallel",),  # lets v7x shard rows across 2 TCs
            vmem_limit_bytes=int(vmem_limit),
        ),
    )(x2, gamma, beta)

    if padded:
        out = out[:, :features]
    return out.reshape(orig_shape)


if __name__ == "__main__":
    key = jax.random.PRNGKey(0)
    batch, seq, hidden = 2, 8, 32

    x = jax.random.normal(key, (batch, seq, hidden), dtype=jnp.float32)

    # Deterministic parameter init matching nn.Parameter(torch.ones/zeros(features)).
    a_2 = jnp.ones((hidden,), dtype=jnp.float32)
    b_2 = jnp.zeros((hidden,), dtype=jnp.float32)

    # TODO(synk): Decoder's N sub-layers are clones of an opaque user-supplied
    # `layer` module with no defined forward math; only the concrete final
    # LayerNorm is implemented as a Pallas kernel.
    out = layer_norm(x, a_2, b_2, eps=1e-6)
    jax.block_until_ready(out)

    # Reference check in plain JAX (same math as the PyTorch module).
    mean = jnp.mean(x, axis=-1, keepdims=True)
    std = jnp.sqrt(
        jnp.sum((x - mean) ** 2, axis=-1, keepdims=True) / (hidden - 1)
    )
    ref = a_2 * (x - mean) / (std + 1e-6) + b_2
    assert jnp.allclose(out, ref, atol=1e-5, rtol=1e-5), "mismatch vs reference"
    assert out.shape == x.shape and out.dtype == x.dtype

    print("KERNEL_OK")
</pallas_src>

<mosaic_0001>
module attributes {stable_mosaic.version = 11 : i64} {
  func.func @_layernorm_kernel(%arg0: i32, %arg1: memref<8x128xf32, #tpu.memory_space<vmem>>, %arg2: memref<1x128xf32, #tpu.memory_space<vmem>>, %arg3: memref<1x128xf32, #tpu.memory_space<vmem>>, %arg4: memref<8x128xf32, #tpu.memory_space<vmem>>) attributes {dimension_semantics = [#tpu.dimension_semantics<parallel>], iteration_bounds = array<i64: 2>, scalar_prefetch = 0 : i64, scratch_operands = 0 : i64, tpu.core_type = #tpu.core_type<tc>, window_params = [{transform_indices = @transform_0, window_bounds = array<i64: 8, 128>}, {pipeline_mode = #tpu.pipeline_mode<synchronous>, transform_indices = @transform_1, window_bounds = array<i64: 1, 128>}, {pipeline_mode = #tpu.pipeline_mode<synchronous>, transform_indices = @transform_2, window_bounds = array<i64: 1, 128>}, {transform_indices = @transform_3, window_bounds = array<i64: 8, 128>}]} {
    %c0 = arith.constant 0 : index
    %c0_0 = arith.constant 0 : index
    %0 = vector.load %arg1[%c0, %c0_0] : memref<8x128xf32, #tpu.memory_space<vmem>>, vector<8x128xf32>
    %c0_1 = arith.constant 0 : index
    %c0_2 = arith.constant 0 : index
    %1 = vector.load %arg2[%c0_1, %c0_2] : memref<1x128xf32, #tpu.memory_space<vmem>>, vector<1x128xf32>
    %c0_3 = arith.constant 0 : index
    %c0_4 = arith.constant 0 : index
    %2 = vector.load %arg3[%c0_3, %c0_4] : memref<1x128xf32, #tpu.memory_space<vmem>>, vector<1x128xf32>
    %cst = arith.constant dense<0.000000e+00> : vector<8xf32>
    %3 = vector.multi_reduction <add>, %0, %cst [1] : vector<8x128xf32> to vector<8xf32>
    %4 = vector.shape_cast %3 : vector<8xf32> to vector<8x1xf32>
    %cst_5 = arith.constant 3.125000e-02 : f32
    %5 = vector.broadcast %cst_5 : f32 to vector<8x1xf32>
    %6 = arith.mulf %4, %5 : vector<8x1xf32>
    %7 = vector.broadcast %6 : vector<8x1xf32> to vector<8x128xf32>
    %8 = arith.subf %0, %7 : vector<8x128xf32>
    %9 = tpu.iota {dimensions = array<i32: 1>} : vector<8x128xi32>
    %c32_i32 = arith.constant 32 : i32
    %10 = vector.broadcast %c32_i32 : i32 to vector<8x128xi32>
    %11 = arith.cmpi slt, %9, %10 : vector<8x128xi32>
    %cst_6 = arith.constant 0.000000e+00 : f32
    %12 = vector.broadcast %cst_6 : f32 to vector<8x128xf32>
    %13 = arith.select %11, %8, %12 : vector<8x128xi1>, vector<8x128xf32>
    %14 = arith.mulf %13, %13 : vector<8x128xf32>
    %cst_7 = arith.constant dense<0.000000e+00> : vector<8xf32>
    %15 = vector.multi_reduction <add>, %14, %cst_7 [1] : vector<8x128xf32> to vector<8xf32>
    %16 = vector.shape_cast %15 : vector<8xf32> to vector<8x1xf32>
    %cst_8 = arith.constant 0.0322580636 : f32
    %17 = vector.broadcast %cst_8 : f32 to vector<8x1xf32>
    %18 = arith.mulf %16, %17 : vector<8x1xf32>
    %19 = math.sqrt %18 : vector<8x1xf32>
    %cst_9 = arith.constant 9.99999997E-7 : f32
    %20 = vector.broadcast %cst_9 : f32 to vector<8x1xf32>
    %21 = arith.addf %19, %20 : vector<8x1xf32>
    %22 = tpu.reciprocal %21 : vector<8x1xf32> -> vector<8x1xf32>
    %23 = vector.broadcast %22 : vector<8x1xf32> to vector<8x128xf32>
    %24 = arith.mulf %8, %23 : vector<8x128xf32>
    %25 = vector.broadcast %1 : vector<1x128xf32> to vector<8x128xf32>
    %26 = arith.mulf %25, %24 : vector<8x128xf32>
    %27 = vector.broadcast %2 : vector<1x128xf32> to vector<8x128xf32>
    %28 = arith.addf %26, %27 : vector<8x128xf32>
    %c0_10 = arith.constant 0 : index
    %c0_11 = arith.constant 0 : index
    %29 = vector.load %arg4[%c0_10, %c0_11] : memref<8x128xf32, #tpu.memory_space<vmem>>, vector<8x128xf32>
    tpu.vector_store %arg4[%c0_10, %c0_11], %28 {strides = array<i32>} : memref<8x128xf32, #tpu.memory_space<vmem>>, vector<8x128xf32>,
    return
  }
  func.func @transform_0(%arg0: i32) -> (i32, i32) {
    %c0_i32 = arith.constant 0 : i32
    %c0_i32_0 = arith.constant 0 : i32
    return %arg0, %c0_i32 : i32, i32
  }
  func.func @transform_1(%arg0: i32) -> (i32, i32) {
    %c0_i32 = arith.constant 0 : i32
    %c0_i32_0 = arith.constant 0 : i32
    %c0_i32_1 = arith.constant 0 : i32
    return %c0_i32, %c0_i32_0 : i32, i32
  }
  func.func @transform_2(%arg0: i32) -> (i32, i32) {
    %c0_i32 = arith.constant 0 : i32
    %c0_i32_0 = arith.constant 0 : i32
    %c0_i32_1 = arith.constant 0 : i32
    return %c0_i32, %c0_i32_0 : i32, i32
  }
  func.func @transform_3(%arg0: i32) -> (i32, i32) {
    %c0_i32 = arith.constant 0 : i32
    %c0_i32_0 = arith.constant 0 : i32
    return %arg0, %c0_i32 : i32, i32
  }
}

</mosaic_0001>

<bundles_post_ra>
// kernel: tpu_custom_call.1
= control target key start
LH: loop header
LB: loop body
LE: loop exit
PB: predicated region body
PF: predicated region fallthrough
CT: control target
= control target key end

     0   :  { %8 = vsyncpa [#allocation3], 0  ;;  %s726_s0 = inlined_call_operand.hbm [shape: f32[16,128], index: 0, kind: input, shape index: {}]   ;;  %s727_s1 = inlined_call_operand.hbm [shape: f32[1,128], index: 1, kind: input, shape index: {}]   ;;  %s728_s2 = inlined_call_operand.vmem [shape: f32[1,128], index: 2, kind: input, shape index: {}]   ;;  %s729_s3 = inlined_call_operand.hbm [shape: f32[16,128], index: 3, kind: output, shape index: {}]  }
   0x1   :  { %10 = vsyncpa [#allocation3 + $0x1], 0 }
   0x2   :  { %11 = vsyncpa [#allocation6], 0 }
   0x3   :  { %12 = vsyncpa [#allocation4], 0 }
   0x4   :  { %14 = vsyncpa [#allocation4 + $0x1], 0  ;;  %s581_s12 = smov 0   ;;  %s583_s13 = smov 0  }
   0x5   :  { %s585_s14 = smov 0   ;;  %s587_s15 = smov 0  }
   0x6 LB: > { %s602_s16 = sadd.s32 4294967295, %s558_s15   ;;  %s351_s17 = sadd.s32 4294967294, %s558_s15   ;;  %s558_s15 = sphi %s587_s15, %s739_s15   ;;  %s554_s14 = sphi %s585_s14, %s738_s14   ;;  %s550_s13 = sphi %s583_s13, %s737_s13   ;;  %s546_s12 = sphi %s581_s12, %s736_s12  }
   0x7   : > { %p40_p0 = scmp.ne.s32.totalorder %s550_s13, %s546_s12  ;;  %p41_p1 = scmp.eq.s32.totalorder %s602_s16, 0 }
   0x8   : > { %p106_p2 = scmp.eq.s32.totalorder %s602_s16, 1  ;;  %p112_p3 = scmp.eq.s32.totalorder %s351_s17, 1 }
   0x9   : > { %p611_p4 = por %p41_p1, %p40_p0  ;;  %p352_p5 = scmp.ge.s32.totalorder %s558_s15, 1 }
   0xa   : > { %p616_p6 = por %p112_p3, %p40_p0  ;;  %p119_p7 = scmp.lt.s32.totalorder %s558_s15, 3 }
   0xb   : > { %s131_s22 = sshll.u32 %s727_s1, 4  ;;  %s560_s24 = smov [#allocation5]   ;;  %s132_s22 = int_to_ptr.hbm [resolvable:$true] %s131_s22 }
   0xc   : > { %p624_p8 = pnand %p352_p5, %p119_p7  ;;  %s133_s25 = sshll.u32 %s560_s24, 4  ;;  %s134_s25 = int_to_ptr.vmem [resolvable:$true] %s133_s25 }
   0xd   : > { %s634_s26 = sadd.s32 1, %s558_s15   ;;  %s27_s27 = sadd.s32 1, %s554_s14 }
   0xe   : > { %p373_p10 = pneg %p624_p8  ;;  %s24_s28 = ssub.s32 %s558_s15, %s634_s26 }
   0xf   : > { %p25_p12 = scmp.eq.s32.totalorder %s24_s28, 0  ;;  %p34_p13 = scmp.ne.s32.totalorder %s554_s14, %s550_s13 }
  0x10   : > { %p374_p11 = pnand %p373_p10, %p41_p1  ;;  %p35_p0 = scmp.eq.s32.totalorder %s558_s15, 0 }
  0x11   : > { %s643_s29 = scalar_select %p25_p12, %s554_s14, %s27_s27  }
  0x12   : > { %376 = dma.hbm_to_vmem [thread:$0]  (!%p374_p11), %s132_s22, 16, %s134_s25, [#allocation6]  }
  0x13   : > { %p647_p3 = por %p106_p2, %p34_p13  ;;  %p386_p5 = scmp.lt.s32.totalorder %s558_s15, 2 }
  0x14   : > { %s147_s4 = sand.u32 1, %s554_s14   ;;  %s356_s5 = sshll.u32 %s558_s15, 3 }
  0x15   : > { %p36_p7 = por %p35_p0, %p34_p13  ;;  %s355_s6 = sshll.u32 %s147_s4, 3 }
  0x16   : > { %s155_s9 = scalar_lea.hbm %s726_s0, %s356_s5  ;;  %s151_s11 = scalar_lea.vmem [#allocation2], %s355_s6 }
  0x17   : > { %s157_s10 = sshll.u32 %s155_s9, 4  ;;  %s159_s17 = sshll.u32 %s151_s11, 4  ;;  %s158_s10 = int_to_ptr.hbm [resolvable:$true] %s157_s10  ;;  %s160_s17 = int_to_ptr.vmem [resolvable:$true] %s159_s17 }
  0x18   : > { %p657_p10 = pnand %p386_p5, %p36_p7  ;;  %s148_s21 = scalar_lea.sflag [#allocation3], %s147_s4 }
  0x19   : > { %s458_s22 = sshra.s32 %s158_s10, 4  ;;  %s465_s28 = scalar_lea.hbm %s726_s0, 16  ;;  %s459_s22 = int_to_ptr.hbm [resolvable:$true] %s458_s22 }
  0x1a   : > { %s460_s24 = scalar_lea.hbm %s459_s22, 8  ;;  %p462_p11 = pneg %p657_p10 }
  0x1b   : > { %p461_p2 = scmp.ne.s32.totalorder %s459_s22, %s460_s24  ;;  %p466_p0 = scmp.lt.s32.totalorder %s459_s22, %s726_s0 }
  0x1c   : > { %p467_p5 = scmp.lt.s32.totalorder %s465_s28, %s460_s24 }
  0x1d   : > { %p463_p12 = pnand %p462_p11, %p461_p2 }
  0x1e   : > { %p468_p7 = por %p467_p5, %p466_p0 }
  0x1f   : > { %p464_p13 = pneg %p463_p12 }
  0x21   : > { %p469_p9 = pnand %p468_p7, %p464_p13 }
  0x23   : > { %472 = shalt.err (!%p469_p9)
}
  0x24   : > { %380 = dma.hbm_to_vmem [thread:$0]  (!%p657_p10), %s158_s10, 128, %s160_s17, %s148_s21  }
  0x25   : > { %168 = sbr.rel (%p624_p8) target bundleno = 336 (0x150), region = 32  ;;  %s674_s4 = sand.u32 (!%p624_p8), 1, %s550_s13  }
  0x26   : > { %s358_s7 = sshll.u32 (!%p624_p8), %s674_s4, 3  ;;  %s171_s8 = scalar_lea.sflag (!%p624_p8), [#allocation3], %s674_s4 }
  0x27   : > { %s174_s9 = scalar_lea.vmem (!%p624_p8), [#allocation2], %s358_s7 }
  0x2a   : > { %533 = dma.done.wait (%p611_p4), %s171_s8, 128  }
  0x2b   : > { %535 = vsyncadd (%p611_p4), %s171_s8, 4294967168 }
  0x2c   : > { %537 = dma.done.wait (%p41_p1), [#allocation6], 16  }
  0x2d   : > { %539 = vsyncadd (%p41_p1), [#allocation6], 4294967280  ;;  %v203_v0 = vld [vmem:[%s174_s9] sm:$0xff]  ;;  %v210_v1 = vlaneseq  ;;  %s362_s18 = sshll.u32 %s602_s16, 3  ;;  %v422_v30 = vld [vmem:[#allocation5] ss:$0 sm:$0xff] }
  0x2e   : > { %206 = vadd.xlane.f32.xlu0 %v203_v0  ;;  %s266_s11 = scalar_lea.hbm %s729_s3, %s362_s18  ;;  %v423_v33 = vld [vmem:[%s728_s2] ss:$0 sm:$0xff]  ;;  %s202_s16 = scalar_lea.vmem [#allocation7], %s358_s7 }
  0x2f   : > { %v211_v2 = vand.u32 127, %v210_v1  ;;  %s268_s21 = sshll.u32 %s202_s16, 4  ;;  %s270_s22 = sshll.u32 %s266_s11, 4  ;;  %s269_s21 = int_to_ptr.vmem [resolvable:$true] %s268_s21  ;;  %s271_s22 = int_to_ptr.hbm [resolvable:$true] %s270_s22 }
  0x30   : > { %s256_s24 = scalar_lea.sflag [#allocation4], %s674_s4  ;;  %s502_s25 = sshra.s32 %s271_s22, 4  ;;  %s503_s25 = int_to_ptr.hbm [resolvable:$true] %s502_s25 }
  0x31   : > { %vm212_vm0 = vcmp.lt.s32.totalorder %v211_v2, 32  ;;  %s504_s27 = scalar_lea.hbm %s503_s25, 8  ;;  %s508_s6 = scalar_lea.hbm %s729_s3, 16 }
  0x32   : > { %p505_p1 = scmp.ne.s32.totalorder %s503_s25, %s504_s27  ;;  %p509_p9 = scmp.lt.s32.totalorder %s503_s25, %s729_s3 }
  0x33   : > { %p510_p10 = scmp.lt.s32.totalorder %s508_s6, %s504_s27 }
  0x34   : > { %p506_p4 = pnand %p505_p1, %p647_p3 }
  0x35   : > { %p511_p2 = por %p510_p10, %p509_p9 }
  0x36   : > { %p507_p8 = pneg %p506_p4 }
  0x38   : > { %p512_p11 = pnand %p511_p2, %p507_p8 }
  0xa1   : > { %v207_v3 = vpop.xlane.xlu0 %206 }
  0xa2   : > { %v208_v4 = vmul.f32 0.03125, %v207_v3 }
  0xa4   : > { %v209_v5 = vsub.f32 %v203_v0, %v208_v4 }
  0xa6   : > { %v213_v6 = vsel %vm212_vm0, %v209_v5, 0.0 }
  0xa7   : > { %v214_v7 = vmul.f32 %v213_v6, %v213_v6 }
  0xa9   : > { %215 = vadd.xlane.f32.xlu0 %v214_v7 }
 0x11c   : > { %v216_v8 = vpop.xlane.xlu0 %215 }
 0x11d   : > { %v217_v9 = vmul.f32 0.032258064, %v216_v8 }
 0x11f   : > { %424 = vrsqrt.f32 %v217_v9  ;;  %vm225_vm1 = vcmp.eq.f32.partialorder %v217_v9, inf  ;;  %v228_v17 = vand.u32 2147483648, %v217_v9  ;;  %vm227_vm2 = vcmp.eq.f32.partialorder %v217_v9, 0.0 }
 0x125   : > { %v425_v10 = vpop.eup %424 }
 0x126   : > { %v219_v11 = vmul.f32 %v425_v10, %v217_v9 }
 0x128   : > { %v220_v12 = vmul.f32 %v425_v10, %v219_v11 }
 0x12a   : > { %v221_v13 = vmul.f32 0.5, %v220_v12 }
 0x12c   : > { %v222_v14 = vsub.f32 1.5, %v221_v13 }
 0x12e   : > { %v223_v15 = vmul.f32 %v425_v10, %v222_v14 }
 0x130   : > { %v224_v16 = vmul.f32 %v223_v15, %v217_v9 }
 0x132   : > { %v226_v18 = vsel %vm225_vm1, %v217_v9, %v224_v16 }
 0x133   : > { %v229_v19 = vsel %vm227_vm2, %v228_v17, %v226_v18 }
 0x134   : > { %v230_v20 = vadd.f32 1e-06, %v229_v19 }
 0x136   : > { %426 = vrcp.f32 %v230_v20  ;;  %v242_v24 = vand.u32 2147483648, %v230_v20  ;;  %v240_v26 = vand.u32 2147483647, %v230_v20  ;;  %vm236_vm4 = vweird.f32 %v230_v20 }
 0x138   : > { %v243_v28 = vor.u32 1.1754944e-38, %v242_v24  ;;  %vm241_vm6 = vcmp.eq.f32.partialorder %v240_v26, 8.507059e+37 }
 0x13c   : > { %v427_v21 = vpop.eup %426 }
 0x13d   : > { %v232_v22 = vmul.f32 %v427_v21, %v230_v20  ;;  %vm237_vm3 = vweird.f32 %v427_v21 }
 0x13e   : > { %vm238_vm5 = vmor %vm236_vm4, %vm237_vm3 }
 0x13f   : > { %v233_v23 = vsub.f32 1.0, %v232_v22 }
 0x141   : > { %v234_v25 = vmul.f32 %v427_v21, %v233_v23 }
 0x143   : > { %v235_v27 = vadd.f32 %v427_v21, %v234_v25 }
 0x145   : > { %v239_v29 = vsel %vm238_vm5, %v427_v21, %v235_v27 }
 0x146   : > { %v244_v31 = vsel %vm241_vm6, %v243_v28, %v239_v29 }
 0x147   : > { %v245_v32 = vmul.f32 %v244_v31, %v209_v5 }
 0x149   : > { %v249_v34 = vmul.f32 %v422_v30, %v245_v32 }
 0x14b   : > { %v253_v35 = vadd.f32 %v423_v33, %v249_v34 }
 0x14d   : > { %254 = vst [vmem:[%s202_s16] sm:$0xff] %v253_v35 }
 0x14e   : > { %515 = shalt.err (!%p512_p11)
}
 0x14f   : > { %371 = dma.vmem_to_hbm [thread:$0]  (%p647_p3), %s269_s21, 128, %s271_s22, %s256_s24  }
 0x150 PF: > { %s282_s4 = sand.u32 1, %s546_s12   ;;  %p735_p12 = scmp.ge.s32.totalorder %s558_s15, 2 }
 0x151   : > { %s283_s9 = scalar_lea.sflag [#allocation4], %s282_s4 }
 0x152   : > { %p382_p13 = pnand %p735_p12, %p616_p6 }
 0x154   : > { %p383_p0 = pneg %p382_p13 }
 0x156   : > { %541 = dma.done.wait (%p383_p0), %s283_s9, 128  }
 0x157   : > { %543 = vsyncadd (%p383_p0), %s283_s9, 4294967168  ;;  %p17_p5 = scmp.ge.s32.totalorder %s634_s26, 4   ;;  %s736_s12 = smov %s550_s13 }
 0x158   : > { %s737_s13 = smov %s554_s14  ;;  %s738_s14 = smov %s643_s29 }
 0x159   : > { %s739_s15 = smov %s634_s26  ;;  %19 = sbr.rel (!%p17_p5) target bundleno = 6 (0x6), region = 81 }
 0x15e   :  { %289 = vsyncpa [#allocation3], 1 }
 0x15f   :  { %291 = vsyncpa [#allocation3 + $0x1], 1 }
 0x160   :  { %292 = vsyncpa [#allocation6], 1 }
 0x161   :  { %293 = vsyncpa [#allocation4], 1 }
 0x162   :  { %295 = vsyncpa [#allocation4 + $0x1], 1 }

</bundles_post_ra>
